<compile_context>
chip_gen: v5e
topology: v5e:2x2
jax: 0.10.0
libtpu: 0.0.40
codegen_flags: <defaults>
</compile_context>

<pallas_src>
import functools

import jax
import jax.numpy as jnp
from jax import lax
from jax.experimental import pallas as pl
from jax.experimental.pallas import tpu as pltpu


def _byol_loss_kernel(z1_ref, z2_ref, tz1_ref, tz2_ref, out_ref, acc_ref,
                      *, batch, tile_b):
    i = pl.program_id(0)
    n_steps = pl.num_programs(0)

    @pl.when(i == 0)
    def _init():
        acc_ref[0, 0] = jnp.float32(0.0)

    z1 = z1_ref[...].astype(jnp.float32)
    z2 = z2_ref[...].astype(jnp.float32)
    tz1 = tz1_ref[...].astype(jnp.float32)
    tz2 = tz2_ref[...].astype(jnp.float32)

    # F.normalize(x, dim=-1, p=2) == x / max(||x||_2, 1e-12); folded into the
    # row dot: dot * rsqrt(max(ssq_a, eps^2)) * rsqrt(max(ssq_b, eps^2)).
    eps_sq = jnp.float32(1e-24)

    n_z1 = jnp.maximum(jnp.sum(z1 * z1, axis=-1, keepdims=True), eps_sq)
    n_z2 = jnp.maximum(jnp.sum(z2 * z2, axis=-1, keepdims=True), eps_sq)
    n_tz1 = jnp.maximum(jnp.sum(tz1 * tz1, axis=-1, keepdims=True), eps_sq)
    n_tz2 = jnp.maximum(jnp.sum(tz2 * tz2, axis=-1, keepdims=True), eps_sq)

    dot_1 = jnp.sum(z1 * tz2, axis=-1, keepdims=True)   # [TB, 1]
    dot_2 = jnp.sum(z2 * tz1, axis=-1, keepdims=True)   # [TB, 1]

    s1 = dot_1 * lax.rsqrt(n_z1) * lax.rsqrt(n_tz2)
    s2 = dot_2 * lax.rsqrt(n_z2) * lax.rsqrt(n_tz1)

    # Mask padded rows of the last (partial) batch tile before accumulating.
    row = lax.broadcasted_iota(jnp.int32, (tile_b, 1), 0) + i * tile_b
    contrib = jnp.where(row < batch, s1 + s2, jnp.float32(0.0))

    acc_ref[0, 0] += jnp.sum(contrib)

    @pl.when(i == n_steps - 1)
    def _finalize():
        # loss = mean over B of -(s1 + s2) / 2  ==  -sum / (2 * B)
        out_ref[0, 0] = -acc_ref[0, 0] / jnp.float32(2.0 * batch)


def _pick_tile_b(batch, dim):
    # ~1 MiB of f32 working set per input block; 4 inputs x 2 pipeline buffers
    # stays well under every generation's scoped-VMEM default while keeping
    # the tile large enough to amortize the ~0.35 us per-grid-step overhead.
    budget_per_block = 1 << 20
    tb = budget_per_block // max(1, dim * 4)
    tb = max(8, min(1024, (tb // 8) * 8))
    if batch <= tb:
        return batch            # single full-batch tile (full dims are exempt)
    return tb                   # multiple of 8


def byol_loss(z1, z2, target_z1, target_z2, *, tile_b=None):
    """BYOLLoss.forward(z1, z2, target_z1, target_z2) -> scalar (f32)."""
    assert z1.shape == z2.shape == target_z1.shape == target_z2.shape
    assert z1.ndim == 2, "expected [B, D] embeddings"
    B, D = z1.shape

    if tile_b is None:
        tile_b = _pick_tile_b(B, D)
    tile_b = min(tile_b, B)
    if tile_b < B:
        tile_b = max(8, (tile_b // 8) * 8)   # (8, 128) sublane constraint
    num_tiles = pl.cdiv(B, tile_b)

    emb_spec = pl.BlockSpec((tile_b, D), lambda i: (i, 0))
    kernel = functools.partial(_byol_loss_kernel, batch=B, tile_b=tile_b)

    out = pl.pallas_call(
        kernel,
        out_shape=jax.ShapeDtypeStruct((1, 1), jnp.float32),
        grid_spec=pltpu.PrefetchScalarGridSpec(
            num_scalar_prefetch=0,
            grid=(num_tiles,),
            in_specs=[emb_spec, emb_spec, emb_spec, emb_spec],
            out_specs=pl.BlockSpec((1, 1), lambda i: (0, 0),
                                   memory_space=pltpu.MemorySpace.SMEM),
            scratch_shapes=[pltpu.SMEM((1, 1), jnp.float32)],
        ),
        compiler_params=pltpu.CompilerParams(
            dimension_semantics=("arbitrary",),
            vmem_limit_bytes=32 * 1024 * 1024,
        ),
    )(z1, z2, target_z1, target_z2)
    return out[0, 0]


def _byol_loss_ref(z1, z2, tz1, tz2):
    def norm(x):
        n = jnp.sqrt(jnp.sum(x * x, axis=-1, keepdims=True))
        return x / jnp.maximum(n, 1e-12)

    z1, z2, tz1, tz2 = norm(z1), norm(z2), norm(tz1), norm(tz2)
    s1 = jnp.sum(z1 * tz2, axis=-1)
    s2 = jnp.sum(z2 * tz1, axis=-1)
    return jnp.mean(-(s1 + s2) / 2.0)


if __name__ == "__main__":
    key = jax.random.PRNGKey(0)

    # --- case 1: multi-tile grid with a masked partial last tile (f32) ------
    B, D = 20, 128
    k1, k2, k3, k4 = jax.random.split(key, 4)
    z1 = jax.random.normal(k1, (B, D), dtype=jnp.float32)
    z2 = jax.random.normal(k2, (B, D), dtype=jnp.float32)
    target_z1 = jax.random.normal(k3, (B, D), dtype=jnp.float32)
    target_z2 = jax.random.normal(k4, (B, D), dtype=jnp.float32)

    loss = byol_loss(z1, z2, target_z1, target_z2, tile_b=8)  # grid=3, 4 valid rows in last tile
    jax.block_until_ready(loss)
    ref = _byol_loss_ref(z1, z2, target_z1, target_z2)
    assert jnp.allclose(loss, ref, atol=1e-5, rtol=1e-5), (loss, ref)

    # --- case 2: bf16 in HBM, f32 math in-kernel, single-tile path ----------
    B2, D2 = 16, 128
    kk = jax.random.split(k4, 4)
    a1 = jax.random.normal(kk[0], (B2, D2), dtype=jnp.float32)
    a2 = jax.random.normal(kk[1], (B2, D2), dtype=jnp.float32)
    t1 = jax.random.normal(kk[2], (B2, D2), dtype=jnp.float32)
    t2 = jax.random.normal(kk[3], (B2, D2), dtype=jnp.float32)
    b1, b2, bt1, bt2 = (x.astype(jnp.bfloat16) for x in (a1, a2, t1, t2))

    loss2 = byol_loss(b1, b2, bt1, bt2)
    jax.block_until_ready(loss2)
    ref2 = _byol_loss_ref(b1.astype(jnp.float32), b2.astype(jnp.float32),
                          bt1.astype(jnp.float32), bt2.astype(jnp.float32))
    assert jnp.allclose(loss2, ref2, atol=1e-3, rtol=1e-3), (loss2, ref2)

    print("KERNEL_OK")
</pallas_src>

<mosaic_0001>
module attributes {stable_mosaic.version = 11 : i64} {
  func.func @_byol_loss_kernel(%arg0: i32, %arg1: memref<8x128xf32, #tpu.memory_space<vmem>>, %arg2: memref<8x128xf32, #tpu.memory_space<vmem>>, %arg3: memref<8x128xf32, #tpu.memory_space<vmem>>, %arg4: memref<8x128xf32, #tpu.memory_space<vmem>>, %arg5: memref<1x1xf32, #tpu.memory_space<smem>>, %arg6: memref<1x1xf32, #tpu.memory_space<smem>>) attributes {dimension_semantics = [#tpu.dimension_semantics<arbitrary>], iteration_bounds = array<i64: 3>, scalar_prefetch = 0 : i64, scratch_operands = 1 : i64, tpu.core_type = #tpu.core_type<tc>, window_params = [{transform_indices = @transform_0, window_bounds = array<i64: 8, 128>}, {transform_indices = @transform_1, window_bounds = array<i64: 8, 128>}, {transform_indices = @transform_2, window_bounds = array<i64: 8, 128>}, {transform_indices = @transform_3, window_bounds = array<i64: 8, 128>}, {transform_indices = @transform_4, window_bounds = array<i64: 1, 1>}]} {
    %c0_i32 = arith.constant 0 : i32
    %0 = arith.cmpi eq, %arg0, %c0_i32 : i32
    %1 = arith.extui %0 : i1 to i32
    %c0_i32_0 = arith.constant 0 : i32
    %2 = arith.cmpi ne, %1, %c0_i32_0 : i32
    scf.if %2 {
      %cst_24 = arith.constant 0.000000e+00 : f32
      %c0_25 = arith.constant 0 : index
      %c0_26 = arith.constant 0 : index
      %60 = memref.load %arg6[%c0_25, %c0_26] : memref<1x1xf32, #tpu.memory_space<smem>>
      memref.store %cst_24, %arg6[%c0_25, %c0_26] : memref<1x1xf32, #tpu.memory_space<smem>>
    } else {
    }
    %c0 = arith.constant 0 : index
    %c0_1 = arith.constant 0 : index
    %3 = vector.load %arg1[%c0, %c0_1] : memref<8x128xf32, #tpu.memory_space<vmem>>, vector<8x128xf32>
    %c0_2 = arith.constant 0 : index
    %c0_3 = arith.constant 0 : index
    %4 = vector.load %arg2[%c0_2, %c0_3] : memref<8x128xf32, #tpu.memory_space<vmem>>, vector<8x128xf32>
    %c0_4 = arith.constant 0 : index
    %c0_5 = arith.constant 0 : index
    %5 = vector.load %arg3[%c0_4, %c0_5] : memref<8x128xf32, #tpu.memory_space<vmem>>, vector<8x128xf32>
    %c0_6 = arith.constant 0 : index
    %c0_7 = arith.constant 0 : index
    %6 = vector.load %arg4[%c0_6, %c0_7] : memref<8x128xf32, #tpu.memory_space<vmem>>, vector<8x128xf32>
    %7 = arith.mulf %3, %3 : vector<8x128xf32>
    %cst = arith.constant dense<0.000000e+00> : vector<8xf32>
    %8 = vector.multi_reduction <add>, %7, %cst [1] : vector<8x128xf32> to vector<8xf32>
    %9 = vector.shape_cast %8 : vector<8xf32> to vector<8x1xf32>
    %cst_8 = arith.constant 1.000000e-24 : f32
    %10 = vector.broadcast %cst_8 : f32 to vector<8x1xf32>
    %11 = arith.maximumf %9, %10 : vector<8x1xf32>
    %12 = arith.mulf %4, %4 : vector<8x128xf32>
    %cst_9 = arith.constant dense<0.000000e+00> : vector<8xf32>
    %13 = vector.multi_reduction <add>, %12, %cst_9 [1] : vector<8x128xf32> to vector<8xf32>
    %14 = vector.shape_cast %13 : vector<8xf32> to vector<8x1xf32>
    %cst_10 = arith.constant 1.000000e-24 : f32
    %15 = vector.broadcast %cst_10 : f32 to vector<8x1xf32>
    %16 = arith.maximumf %14, %15 : vector<8x1xf32>
    %17 = arith.mulf %5, %5 : vector<8x128xf32>
    %cst_11 = arith.constant dense<0.000000e+00> : vector<8xf32>
    %18 = vector.multi_reduction <add>, %17, %cst_11 [1] : vector<8x128xf32> to vector<8xf32>
    %19 = vector.shape_cast %18 : vector<8xf32> to vector<8x1xf32>
    %cst_12 = arith.constant 1.000000e-24 : f32
    %20 = vector.broadcast %cst_12 : f32 to vector<8x1xf32>
    %21 = arith.maximumf %19, %20 : vector<8x1xf32>
    %22 = arith.mulf %6, %6 : vector<8x128xf32>
    %cst_13 = arith.constant dense<0.000000e+00> : vector<8xf32>
    %23 = vector.multi_reduction <add>, %22, %cst_13 [1] : vector<8x128xf32> to vector<8xf32>
    %24 = vector.shape_cast %23 : vector<8xf32> to vector<8x1xf32>
    %cst_14 = arith.constant 1.000000e-24 : f32
    %25 = vector.broadcast %cst_14 : f32 to vector<8x1xf32>
    %26 = arith.maximumf %24, %25 : vector<8x1xf32>
    %27 = arith.mulf %3, %6 : vector<8x128xf32>
    %cst_15 = arith.constant dense<0.000000e+00> : vector<8xf32>
    %28 = vector.multi_reduction <add>, %27, %cst_15 [1] : vector<8x128xf32> to vector<8xf32>
    %29 = vector.shape_cast %28 : vector<8xf32> to vector<8x1xf32>
    %30 = arith.mulf %4, %5 : vector<8x128xf32>
    %cst_16 = arith.constant dense<0.000000e+00> : vector<8xf32>
    %31 = vector.multi_reduction <add>, %30, %cst_16 [1] : vector<8x128xf32> to vector<8xf32>
    %32 = vector.shape_cast %31 : vector<8xf32> to vector<8x1xf32>
    %33 = math.rsqrt %11 : vector<8x1xf32>
    %34 = arith.mulf %29, %33 : vector<8x1xf32>
    %35 = math.rsqrt %26 : vector<8x1xf32>
    %36 = arith.mulf %34, %35 : vector<8x1xf32>
    %37 = math.rsqrt %16 : vector<8x1xf32>
    %38 = arith.mulf %32, %37 : vector<8x1xf32>
    %39 = math.rsqrt %21 : vector<8x1xf32>
    %40 = arith.mulf %38, %39 : vector<8x1xf32>
    %41 = tpu.iota {dimensions = array<i32: 0>} : vector<8x1xi32>
    %c8_i32 = arith.constant 8 : i32
    %42 = arith.muli %arg0, %c8_i32 : i32
    %43 = vector.broadcast %42 : i32 to vector<8x1xi32>
    %44 = arith.addi %41, %43 : vector<8x1xi32>
    %c20_i32 = arith.constant 20 : i32
    %45 = vector.broadcast %c20_i32 : i32 to vector<8x1xi32>
    %46 = arith.cmpi slt, %44, %45 : vector<8x1xi32>
    %47 = arith.addf %36, %40 : vector<8x1xf32>
    %cst_17 = arith.constant 0.000000e+00 : f32
    %48 = vector.broadcast %cst_17 : f32 to vector<8x1xf32>
    %49 = arith.select %46, %47, %48 : vector<8x1xi1>, vector<8x1xf32>
    %c0_18 = arith.constant 0 : index
    %c0_19 = arith.constant 0 : index
    %50 = memref.load %arg6[%c0_18, %c0_19] : memref<1x1xf32, #tpu.memory_space<smem>>
    %51 = vector.shape_cast %49 : vector<8x1xf32> to vector<1x8x1xf32>
    %cst_20 = arith.constant dense<0.000000e+00> : vector<1xf32>
    %52 = vector.multi_reduction <add>, %51, %cst_20 [1, 2] : vector<1x8x1xf32> to vector<1xf32>
    %53 = vector.shape_cast %52 : vector<1xf32> to vector<1x1x1xf32>
    %54 = vector.extract %53[0, 0, 0] : f32 from vector<1x1x1xf32>
    %55 = arith.addf %50, %54 : f32
    %c0_21 = arith.constant 0 : index
    %c0_22 = arith.constant 0 : index
    %56 = memref.load %arg6[%c0_21, %c0_22] : memref<1x1xf32, #tpu.memory_space<smem>>
    memref.store %55, %arg6[%c0_21, %c0_22] : memref<1x1xf32, #tpu.memory_space<smem>>
    %c2_i32 = arith.constant 2 : i32
    %57 = arith.cmpi eq, %arg0, %c2_i32 : i32
    %58 = arith.extui %57 : i1 to i32
    %c0_i32_23 = arith.constant 0 : i32
    %59 = arith.cmpi ne, %58, %c0_i32_23 : i32
    scf.if %59 {
      %c0_24 = arith.constant 0 : index
      %c0_25 = arith.constant 0 : index
      %60 = memref.load %arg6[%c0_24, %c0_25] : memref<1x1xf32, #tpu.memory_space<smem>>
      %cst_26 = arith.constant 0.000000e+00 : f32
      %61 = arith.subf %cst_26, %60 : f32
      %cst_27 = arith.constant 4.000000e+01 : f32
      %62 = arith.divf %61, %cst_27 : f32
      %c0_28 = arith.constant 0 : index
      %c0_29 = arith.constant 0 : index
      %63 = memref.load %arg5[%c0_28, %c0_29] : memref<1x1xf32, #tpu.memory_space<smem>>
      memref.store %62, %arg5[%c0_28, %c0_29] : memref<1x1xf32, #tpu.memory_space<smem>>
    } else {
    }
    return
  }
  func.func @transform_0(%arg0: i32) -> (i32, i32) {
    %c0_i32 = arith.constant 0 : i32
    %c0_i32_0 = arith.constant 0 : i32
    return %arg0, %c0_i32 : i32, i32
  }
  func.func @transform_1(%arg0: i32) -> (i32, i32) {
    %c0_i32 = arith.constant 0 : i32
    %c0_i32_0 = arith.constant 0 : i32
    return %arg0, %c0_i32 : i32, i32
  }
  func.func @transform_2(%arg0: i32) -> (i32, i32) {
    %c0_i32 = arith.constant 0 : i32
    %c0_i32_0 = arith.constant 0 : i32
    return %arg0, %c0_i32 : i32, i32
  }
  func.func @transform_3(%arg0: i32) -> (i32, i32) {
    %c0_i32 = arith.constant 0 : i32
    %c0_i32_0 = arith.constant 0 : i32
    return %arg0, %c0_i32 : i32, i32
  }
  func.func @transform_4(%arg0: i32) -> (i32, i32) {
    %c0_i32 = arith.constant 0 : i32
    %c0_i32_0 = arith.constant 0 : i32
    %c0_i32_1 = arith.constant 0 : i32
    return %c0_i32, %c0_i32_0 : i32, i32
  }
}

</mosaic_0001>

<bundles_post_ra>
// kernel: tpu_custom_call.1
= control target key start
LH: loop header
LB: loop body
LE: loop exit
PB: predicated region body
PF: predicated region fallthrough
CT: control target
= control target key end

     0   :  { %9 = vsyncpa [#allocation4], 0  ;;  %s1041_s0 = inlined_call_operand.hbm [shape: f32[20,128], index: 0, kind: input, shape index: {}]   ;;  %s1042_s1 = inlined_call_operand.hbm [shape: f32[20,128], index: 1, kind: input, shape index: {}]   ;;  %s1043_s2 = inlined_call_operand.hbm [shape: f32[20,128], index: 2, kind: input, shape index: {}]   ;;  %s1044_s3 = inlined_call_operand.hbm [shape: f32[20,128], index: 3, kind: input, shape index: {}]   ;;  %s1045_s4 = inlined_call_operand.hbm [shape: f32[1,1], index: 4, kind: output, shape index: {}]  }
   0x1   :  { %11 = vsyncpa [#allocation4 + $0x1], 0 }
   0x2   :  { %12 = vsyncpa [#allocation7], 0 }
   0x3   :  { %14 = vsyncpa [#allocation7 + $0x1], 0 }
   0x4   :  { %15 = vsyncpa [#allocation10], 0 }
   0x5   :  { %17 = vsyncpa [#allocation10 + $0x1], 0 }
   0x6   :  { %18 = vsyncpa [#allocation5], 0  ;;  %s870_s15 = smov 0   ;;  %s872_s16 = smov 0  }
   0x7   :  { %s874_s17 = smov 0   ;;  %s876_s18 = smov 0  }
   0x8 LB: > { %s889_s19 = sadd.s32 4294967295, %s840_s18   ;;  %s892_s20 = sadd.s32 1, %s840_s18   ;;  %s840_s18 = sphi %s876_s18, %s1052_s18   ;;  %s836_s17 = sphi %s874_s17, %s1051_s17   ;;  %s832_s16 = sphi %s872_s16, %s1050_s16   ;;  %s828_s15 = sphi %s870_s15, %s1049_s15  }
   0x9   : > { %s28_s21 = ssub.s32 %s840_s18, %s892_s20  ;;  %s31_s22 = sadd.s32 1, %s836_s17 }
   0xa   : > { %p29_p0 = scmp.eq.s32.totalorder %s28_s21, 0  ;;  %p38_p1 = scmp.ne.s32.totalorder %s836_s17, %s832_s16 }
   0xb   : > { %p39_p2 = scmp.eq.s32.totalorder %s840_s18, 0  ;;  %p44_p3 = scmp.ne.s32.totalorder %s832_s16, %s828_s15 }
   0xc   : > { %s902_s23 = scalar_select %p29_p0, %s836_s17, %s31_s22  }
   0xd   : > { %p40_p4 = por %p39_p2, %p38_p1  ;;  %p45_p5 = scmp.eq.s32.totalorder %s889_s19, 0 }
   0xe   : > { %p611_p6 = scmp.lt.s32.totalorder %s840_s18, 3  ;;  %s913_s25 = sand.u32 1, %s836_s17  }
   0xf   : > { %p908_p7 = por %p45_p5, %p44_p3  ;;  %s916_s26 = sshll.u32 %s913_s25, 3 }
  0x10   : > { %s919_s27 = sshll.u32 %s840_s18, 3  ;;  %p921_p8 = pnand %p611_p6, %p40_p4 }
  0x11   : > { %s186_s29 = sand.u32 1, %s840_s18   ;;  %s194_s6 = scalar_lea.hbm %s1042_s1, %s919_s27 }
  0x12   : > { %s196_s7 = sshll.u32 %s194_s6, 4  ;;  %s190_s8 = scalar_lea.vmem [#allocation6], %s916_s26  ;;  %s197_s7 = int_to_ptr.hbm [resolvable:$true] %s196_s7 }
  0x13   : > { %s198_s9 = sshll.u32 %s190_s8, 4  ;;  %s931_s10 = scalar_lea.sflag [#allocation7], %s186_s29  ;;  %s199_s9 = int_to_ptr.vmem [resolvable:$true] %s198_s9 }
  0x14   : > { %s660_s11 = sshra.s32 %s197_s7, 4  ;;  %p664_p10 = pneg %p921_p8  ;;  %s661_s11 = int_to_ptr.hbm [resolvable:$true] %s660_s11 }
  0x15   : > { %s662_s12 = scalar_lea.hbm %s661_s11, 8  ;;  %s667_s15 = scalar_lea.hbm %s1042_s1, 24 }
  0x16   : > { %p663_p9 = scmp.ne.s32.totalorder %s661_s11, %s662_s12  ;;  %p668_p13 = scmp.lt.s32.totalorder %s661_s11, %s1042_s1 }
  0x17   : > { %p669_p0 = scmp.lt.s32.totalorder %s667_s15, %s662_s12 }
  0x18   : > { %p665_p11 = pnand %p664_p10, %p663_p9 }
  0x19   : > { %p670_p1 = por %p669_p0, %p668_p13 }
  0x1a   : > { %p666_p12 = pneg %p665_p11 }
  0x1c   : > { %p671_p2 = pnand %p670_p1, %p666_p12 }
  0x1e   : > { %674 = shalt.err (!%p671_p2)
}
  0x1f   : > { %604 = dma.hbm_to_vmem [thread:$0]  (!%p921_p8), %s197_s7, 128, %s199_s9, %s931_s10  }
  0x20   : > { %p568_p3 = scmp.ge.s32.totalorder %s840_s18, 1  ;;  %p241_p4 = scmp.lt.s32.totalorder %s840_s18, 4 }
  0x21   : > { %s175_s6 = scalar_lea.hbm %s1041_s0, %s919_s27  ;;  %s171_s11 = scalar_lea.vmem [#allocation3], %s916_s26 }
  0x22   : > { %p949_p6 = pnand %p568_p3, %p241_p4  ;;  %s177_s8 = sshll.u32 %s175_s6, 4  ;;  %s178_s8 = int_to_ptr.hbm [resolvable:$true] %s177_s8 }
  0x23   : > { %s179_s12 = sshll.u32 %s171_s11, 4  ;;  %s168_s13 = scalar_lea.sflag [#allocation4], %s913_s25  ;;  %s180_s12 = int_to_ptr.vmem [resolvable:$true] %s179_s12 }
  0x24   : > { %s690_s14 = sshra.s32 %s178_s8, 4  ;;  %s697_s9 = scalar_lea.hbm %s1041_s0, 24  ;;  %s691_s14 = int_to_ptr.hbm [resolvable:$true] %s690_s14 }
  0x25   : > { %s692_s15 = scalar_lea.hbm %s691_s14, 8  ;;  %p698_p13 = scmp.lt.s32.totalorder %s691_s14, %s1041_s0 }
  0x26   : > { %p693_p9 = scmp.ne.s32.totalorder %s691_s14, %s692_s15  ;;  %p699_p0 = scmp.lt.s32.totalorder %s697_s9, %s692_s15 }
  0x28   : > { %p695_p11 = pnand %p693_p9, %p664_p10  ;;  %p700_p1 = por %p699_p0, %p698_p13 }
  0x2a   : > { %p696_p12 = pneg %p695_p11 }
  0x2c   : > { %p701_p2 = pnand %p700_p1, %p696_p12 }
  0x2e   : > { %704 = shalt.err (!%p701_p2)
}
  0x2f   : > { %601 = dma.hbm_to_vmem [thread:$0]  (!%p921_p8), %s178_s8, 128, %s180_s12, %s168_s13  }
  0x30   : > { %s213_s6 = scalar_lea.hbm %s1043_s2, %s919_s27  ;;  %s209_s18 = scalar_lea.vmem [#allocation8], %s916_s26 }
  0x31   : > { %s215_s11 = sshll.u32 %s213_s6, 4  ;;  %s217_s7 = sshll.u32 %s209_s18, 4  ;;  %s216_s11 = int_to_ptr.hbm [resolvable:$true] %s215_s11  ;;  %s218_s7 = int_to_ptr.vmem [resolvable:$true] %s217_s7 }
  0x32   : > { %s720_s14 = sshra.s32 %s216_s11, 4  ;;  %s727_s8 = scalar_lea.hbm %s1043_s2, 24  ;;  %s721_s14 = int_to_ptr.hbm [resolvable:$true] %s720_s14 }
  0x33   : > { %s722_s15 = scalar_lea.hbm %s721_s14, 8  ;;  %p728_p11 = scmp.lt.s32.totalorder %s721_s14, %s1043_s2 }
  0x34   : > { %p723_p3 = scmp.ne.s32.totalorder %s721_s14, %s722_s15  ;;  %p729_p12 = scmp.lt.s32.totalorder %s727_s8, %s722_s15 }
  0x36   : > { %p725_p4 = pnand %p723_p3, %p664_p10  ;;  %p730_p13 = por %p729_p12, %p728_p11 }
  0x38   : > { %p726_p9 = pneg %p725_p4 }
  0x3a   : > { %p731_p0 = pnand %p730_p13, %p726_p9 }
  0x3c   : > { %734 = shalt.err (!%p731_p0)
}
  0x3d   : > { %607 = dma.hbm_to_vmem [thread:$0]  (!%p921_p8), %s216_s11, 128, %s218_s7, %s931_s10  }
  0x3e   : > { %s232_s5 = scalar_lea.hbm %s1044_s3, %s919_s27  ;;  %s228_s6 = scalar_lea.vmem [#allocation9], %s916_s26 }
  0x3f   : > { %s236_s18 = sshll.u32 %s228_s6, 4  ;;  %s234_s9 = sshll.u32 %s232_s5, 4  ;;  %s237_s18 = int_to_ptr.vmem [resolvable:$true] %s236_s18  ;;  %s235_s9 = int_to_ptr.hbm [resolvable:$true] %s234_s9 }
  0x40   : > { %s225_s14 = scalar_lea.sflag [#allocation10], %s913_s25  ;;  %s750_s15 = sshra.s32 %s235_s9, 4  ;;  %s751_s15 = int_to_ptr.hbm [resolvable:$true] %s750_s15 }
  0x41   : > { %s752_s21 = scalar_lea.hbm %s751_s15, 8  ;;  %s757_s11 = scalar_lea.hbm %s1044_s3, 24 }
  0x42   : > { %p753_p1 = scmp.ne.s32.totalorder %s751_s15, %s752_s21  ;;  %p758_p4 = scmp.lt.s32.totalorder %s751_s15, %s1044_s3 }
  0x43   : > { %p759_p9 = scmp.lt.s32.totalorder %s757_s11, %s752_s21 }
  0x44   : > { %p755_p2 = pnand %p753_p1, %p664_p10 }
  0x45   : > { %p760_p11 = por %p759_p9, %p758_p4 }
  0x46   : > { %p756_p3 = pneg %p755_p2 }
  0x48   : > { %p761_p12 = pnand %p760_p11, %p756_p3 }
  0x4a   : > { %764 = shalt.err (!%p761_p12)
}
  0x4b   : > { %610 = dma.hbm_to_vmem [thread:$0]  (!%p921_p8), %s235_s9, 128, %s237_s18, %s225_s14  }
  0x4c   : > { %245 = sbr.rel (%p949_p6) target bundleno = 501 (0x1f5), region = 36  ;;  %s247_s25 = sand.u32 (!%p949_p6), 1, %s832_s16  }
  0x4d   : > { %s569_s26 = sshll.u32 (!%p949_p6), %s247_s25, 3  ;;  %s248_s12 = scalar_lea.sflag (!%p949_p6), [#allocation4], %s247_s25 }
  0x4e   : > { %s251_s13 = scalar_lea.vmem (!%p949_p6), [#allocation3], %s569_s26 }
  0x51   : > { %811 = dma.done.wait (%p908_p7), %s248_s12, 128  }
  0x52   : > { %813 = vsyncadd (%p908_p7), %s248_s12, 4294967168  ;;  %s257_s22 = sand.u32 1, %s889_s19   ;;  %s261_s28 = scalar_lea.vmem [#allocation6], %s569_s26 }
  0x53   : > { %s258_s30 = scalar_lea.sflag [#allocation7], %s257_s22 }
  0x54   : > { %815 = dma.done.wait (%p908_p7), %s258_s30, 256  }
  0x55   : > { %817 = vsyncadd (%p908_p7), %s258_s30, 4294967040  ;;  %s271_s29 = scalar_lea.vmem [#allocation8], %s569_s26  ;;  %s278_s5 = scalar_lea.sflag [#allocation10], %s247_s25 }
  0x56   : > { %s281_s6 = scalar_lea.vmem [#allocation9], %s569_s26 }
  0x57   : > { %819 = dma.done.wait (%p908_p7), %s278_s5, 128  }
  0x58   : > { %821 = vsyncadd (%p908_p7), %s278_s5, 4294967168  ;;  %v325_v0 = vld [vmem:[%s271_s29] sm:$0xff]  ;;  %v326_v2 = vld [vmem:[%s281_s6] sm:$0xff]  ;;  %v393_v34 = vlaneseq  ;;  %s574_s24 = sshll.u32 %s889_s19, 3  ;;  %vm402_vm13 = vcmask 7168   ;;  %s842_s18 = smov 0.0  }
  0x59   : > { %v323_v1 = vld [vmem:[%s251_s13] sm:$0xff]  ;;  %v335_v3 = vmul.f32 %v325_v0, %v325_v0  ;;  %v324_v6 = vld [vmem:[%s261_s28] sm:$0xff]  ;;  %v339_v7 = vmul.f32 %v326_v2, %v326_v2  ;;  %v396_v43 = vstv %s574_s24  ;;  %593 = sst [smem:[#allocation2]] (%p45_p5), %s842_s18  ;;  %p575_p7 = scmp.ne.s32.totalorder %s889_s19, 2 }
  0x5a   : > { %v327_v4 = vmul.f32 %v323_v1, %v323_v1  ;;  %v343_v5 = vmul.f32 %v326_v2, %v323_v1  ;;  %v331_v8 = vmul.f32 %v324_v6, %v324_v6  ;;  %v346_v9 = vmul.f32 %v325_v0, %v324_v6  ;;  %s401_s9 = sld [smem:[#allocation2]] }
  0x5b   : > { %336 = vadd.xlane.f32.xlu1 %v335_v3  ;;  %v394_v41 = vshrl.u32 %v393_v34, 7 }
  0x5c   : > { %328 = vadd.xlane.f32.xlu0 %v327_v4  ;;  %344 = vadd.xlane.f32.xlu2 %v343_v5 }
  0x5d   : > { %v397_v50 = vadd.s32 %v396_v43, %v394_v41 }
  0x5f   : > { %vm398_vm12 = vcmp.lt.s32.totalorder %v397_v50, 20 }
  0x63   : > { %340 = vadd.xlane.f32.xlu1 %v339_v7 }
  0x64   : > { %332 = vadd.xlane.f32.xlu0 %v331_v8  ;;  %347 = vadd.xlane.f32.xlu2 %v346_v9 }
  0xce   : > { %v337_v10 = vpop.xlane.xlu1 %336 }
  0xcf   : > { %v329_v11 = vpop.xlane.xlu0 %328  ;;  %v338_v12 = vmax.f32 %v337_v10, 1e-24  ;;  %v345_v26 = vpop.xlane.xlu2 %344 }
  0xd0   : > { %v330_v13 = vmax.f32 %v329_v11, 1e-24 }
  0xd1   : > { %650 = vrsqrt.f32 %v338_v12  ;;  %vm388_vm10 = vweird.f32 %v338_v12 }
  0xd2   : > { %652 = vrsqrt.f32 %v330_v13  ;;  %vm355_vm2 = vweird.f32 %v330_v13 }
  0xd6   : > { %v341_v14 = vpop.xlane.xlu1 %340 }
  0xd7   : > { %v333_v15 = vpop.xlane.xlu0 %332  ;;  %v651_v16 = vpop.eup %650  ;;  %v342_v17 = vmax.f32 %v341_v14, 1e-24 }
  0xd8   : > { %v334_v18 = vmax.f32 %v333_v15, 1e-24  ;;  %v653_v19 = vpop.eup %652  ;;  %v383_v20 = vmul.f32 %v651_v16, %v338_v12  ;;  %vm389_vm6 = vweird.f32 %v651_v16  ;;  %v348_v46 = vpop.xlane.xlu2 %347 }
  0xd9   : > { %v350_v21 = vmul.f32 %v653_v19, %v330_v13  ;;  %654 = vrsqrt.f32 %v342_v17  ;;  %vm356_vm0 = vweird.f32 %v653_v19  ;;  %vm366_vm4 = vweird.f32 %v342_v17  ;;  %vm390_vm11 = vmor %vm388_vm10, %vm389_vm6 }
  0xda   : > { %656 = vrsqrt.f32 %v334_v18  ;;  %v384_v23 = vmul.f32 %v651_v16, %v383_v20  ;;  %vm357_vm5 = vmor %vm355_vm2, %vm356_vm0  ;;  %vm377_vm8 = vweird.f32 %v334_v18 }
  0xdb   : > { %v351_v22 = vmul.f32 %v653_v19, %v350_v21 }
  0xdc   : > { %v385_v29 = vmul.f32 0.5, %v384_v23 }
  0xdd   : > { %v352_v24 = vmul.f32 0.5, %v351_v22 }
  0xde   : > { %v386_v36 = vsub.f32 1.5, %v385_v29 }
  0xdf   : > { %v655_v25 = vpop.eup %654  ;;  %v353_v31 = vsub.f32 1.5, %v352_v24 }
  0xe0   : > { %v657_v27 = vpop.eup %656  ;;  %v361_v28 = vmul.f32 %v655_v25, %v342_v17  ;;  %vm367_vm1 = vweird.f32 %v655_v25  ;;  %v387_v45 = vmul.f32 %v651_v16, %v386_v36 }
  0xe1   : > { %v372_v30 = vmul.f32 %v657_v27, %v334_v18  ;;  %v354_v38 = vmul.f32 %v653_v19, %v353_v31  ;;  %vm378_vm3 = vweird.f32 %v657_v27  ;;  %vm368_vm7 = vmor %vm366_vm4, %vm367_vm1 }
  0xe2   : > { %v362_v32 = vmul.f32 %v655_v25, %v361_v28  ;;  %vm379_vm9 = vmor %vm377_vm8, %vm378_vm3  ;;  %v391_v53 = vsel %vm390_vm11, %v651_v16, %v387_v45 }
  0xe3   : > { %v373_v33 = vmul.f32 %v657_v27, %v372_v30  ;;  %v358_v44 = vsel %vm357_vm5, %v653_v19, %v354_v38 }
  0xe4   : > { %v363_v35 = vmul.f32 0.5, %v362_v32  ;;  %v359_v51 = vmul.f32 %v358_v44, %v345_v26 }
  0xe5   : > { %v374_v37 = vmul.f32 0.5, %v373_v33 }
  0xe6   : > { %v364_v39 = vsub.f32 1.5, %v363_v35 }
  0xe7   : > { %v375_v40 = vsub.f32 1.5, %v374_v37 }
  0xe8   : > { %v365_v42 = vmul.f32 %v655_v25, %v364_v39 }
  0xe9   : > { %v376_v47 = vmul.f32 %v657_v27, %v375_v40 }
  0xea   : > { %v369_v48 = vsel %vm368_vm7, %v655_v25, %v365_v42 }
  0xeb   : > { %v380_v49 = vsel %vm379_vm9, %v657_v27, %v376_v47  ;;  %v370_v54 = vmul.f32 %v369_v48, %v359_v51 }
  0xec   : > { %v381_v52 = vmul.f32 %v380_v49, %v348_v46 }
  0xee   : > { %v392_v55 = vmul.f32 %v391_v53, %v381_v52 }
  0xf0   : > { %v399_v56 = vadd.f32 %v392_v55, %v370_v54 }
  0xf2   : > { %v400_v57 = vsel %vm398_vm12, %v399_v56, 0.0 }
  0xf3   : > { %v403_v58 = vsel %vm402_vm13, %v400_v57, 0.0 }
  0xf4   : > { %404 = vadd.xlane.f32.xlu0 %v403_v58 }
 0x167   : > { %v405_v59 = vpop.xlane.xlu0 %404 }
 0x168   : > { %v406_v60 = vrot.slane %v405_v59, 4 }
 0x16a   : > { %v407_v61 = vadd.f32 %v406_v60, %v405_v59 }
 0x16c   : > { %v408_v62 = vrot.slane %v407_v61, 2 }
 0x16e   : > { %v409_v63 = vadd.f32 %v408_v62, %v407_v61 }
 0x170   : > { %v410_v0 = vrot.slane %v409_v63, 1 }
 0x172   : > { %v411_v1 = vadd.f32 %v410_v0, %v409_v63 }
 0x174   : > { %580 = vpush %v411_v1 }
 0x1a4   : > { %419 = sbr.rel (%p575_p7) target bundleno = 495 (0x1ef), region = 60 }
 0x1a5   : > { %s581_s14 = spop %580 }
 0x1a6   : > { %s413_s15 = sadd.f32 %s581_s14, %s401_s9 }
 0x1a8   : > { %415 = sst [smem:[#allocation2]] %s413_s15 }
 0x1a9   : > { %v843_v2 = vmov 40.0   ;;  %s420_s21 = sld [smem:[#allocation2]] }
 0x1aa   : > { %658 = vrcp.f32 %v843_v2 }
 0x1af   : > { %s421_s8 = ssub.f32 0.0, %s420_s21 }
 0x1b0   : > { %v659_v3 = vpop.eup %658 }
 0x1b1   : > { %v423_v4 = vmul.f32 40.0, %v659_v3  ;;  %vm427_vm14 = vweird.f32 %v659_v3 }
 0x1b3   : > { %v424_v5 = vsub.f32 1.0, %v423_v4 }
 0x1b5   : > { %v425_v6 = vmul.f32 %v659_v3, %v424_v5 }
 0x1b7   : > { %v426_v7 = vadd.f32 %v659_v3, %v425_v6 }
 0x1b9   : > { %v428_v8 = vsel %vm427_vm14, %v659_v3, %v426_v7 }
 0x1ba   : > { %582 = vpush %v428_v8 }
 0x1eb   : > { %s583_s10 = spop %582 }
 0x1ec   : > { %s430_s11 = smul.f32 %s583_s10, %s421_s8 }
 0x1ee   : > { %432 = sst [smem:[#allocation11]] %s430_s11 }
 0x1ef PF: > { %p613_p5 = scmp.eq.s32.totalorder %s889_s19, 2  ;;  %s439_s25 = sshll.u32 %s1045_s4, 4  ;;  %s440_s25 = int_to_ptr.hbm [resolvable:$true] %s439_s25 }
 0x1f0   : > { %s844_s26 = smov [#allocation11]  }
 0x1f1   : > { %595 = dma.smem_to_hbm (%p613_p5), %s844_s26, 16, %s440_s25, [#allocation5]  }
 0x1f2   : > { %823 = dma.done.wait (%p613_p5), [#allocation5], 16  }
 0x1f3   : > { %825 = vsyncadd (%p613_p5), [#allocation5], 4294967280 }
 0x1f4   : > { %448 = sfence }
 0x1f5 PF: > { %p21_p8 = scmp.ge.s32.totalorder %s892_s20, 5   ;;  %s1049_s15 = smov %s832_s16 }
 0x1f6   : > { %s1050_s16 = smov %s836_s17  ;;  %s1051_s17 = smov %s902_s23 }
 0x1f7   : > { %s1052_s18 = smov %s892_s20  ;;  %23 = sbr.rel (!%p21_p8) target bundleno = 8 (0x8), region = 121 }
 0x1fc   :  { %454 = vsyncpa [#allocation4], 1 }
 0x1fd   :  { %456 = vsyncpa [#allocation4 + $0x1], 1 }
 0x1fe   :  { %457 = vsyncpa [#allocation7], 1 }
 0x1ff   :  { %459 = vsyncpa [#allocation7 + $0x1], 1 }
 0x200   :  { %460 = vsyncpa [#allocation10], 1 }
 0x201   :  { %462 = vsyncpa [#allocation10 + $0x1], 1 }
 0x202   :  { %463 = vsyncpa [#allocation5], 1 }
 0x203   :  { %465 = vsyncpa [#allocation5 + $0x1], 1 }

</bundles_post_ra>
